<compile_context>
chip_gen: v6e
topology: v6e:2x2x1
jax: 0.10.0
libtpu: 0.0.40
codegen_flags: <defaults>
</compile_context>

<pallas_src>
import jax
import jax.numpy as jnp
from jax import lax
from jax.experimental import pallas as pl
from jax.experimental.pallas import tpu as pltpu

NODE = 16           # hidden width
IN_DIM = 9          # input features
OUT_DIM = 2         # classes
NUM_LAYERS = 5      # 4 hidden + 1 output linear
LEAK = 0.1
BLOCK_B_MAX = 4096  # max batch (lane) tile; multiple of 128, sweepable 2k-8k


def mlp_kernel(x_ref, w_ref, b_ref, out_ref):
    # x_ref:  (bt, IN_DIM)  f32, native row-major layout (batch on sublanes)
    # w_ref:  (NUM_LAYERS*NODE, NODE) packed weights, (out, in) per layer block
    # b_ref:  (NUM_LAYERS*NODE, 1)    packed biases
    # out_ref:(OUT_DIM, bt)           lane-dense probabilities

    # Layer 1: fold the feature transpose into the matmul: h = W1 @ x^T -> (NODE, bt)
    w1 = w_ref[0:NODE, 0:IN_DIM]                       # (16, 9)
    z = lax.dot_general(
        w1, x_ref[...],
        dimension_numbers=(((1,), (1,)), ((), ())),
        preferred_element_type=jnp.float32) + b_ref[0:NODE, :]
    h = jnp.maximum(z, LEAK * z)                       # LeakyReLU(0.1)

    # Layers 2-4: Linear(16,16) -> LeakyReLU (Dropout = identity in eval mode).
    for l in range(1, 4):
        wl = w_ref[l * NODE:(l + 1) * NODE, :]         # stream operands from VMEM
        bl = b_ref[l * NODE:(l + 1) * NODE, :]
        z = jnp.dot(wl, h, preferred_element_type=jnp.float32) + bl
        h = jnp.maximum(z, LEAK * z)

    # Output Linear(16, 2).
    w5 = w_ref[4 * NODE:4 * NODE + OUT_DIM, :]         # (2, 16)
    b5 = b_ref[4 * NODE:4 * NODE + OUT_DIM, :]
    logits = jnp.dot(w5, h, preferred_element_type=jnp.float32) + b5   # (2, bt)

    # Softmax over the 2 classes, fully elementwise (no cross-lane reduce).
    l0 = logits[0:1, :]
    l1 = logits[1:2, :]
    m = jnp.maximum(l0, l1)
    e0 = jnp.exp(l0 - m)
    e1 = jnp.exp(l1 - m)
    inv = pl.reciprocal(e0 + e1, approx=False)         # exact: rows sum to 1
    out_ref[0:1, :] = (e0 * inv).astype(out_ref.dtype)
    out_ref[1:2, :] = (e1 * inv).astype(out_ref.dtype)


def _round_up(n, m):
    return ((n + m - 1) // m) * m


def _choose_tiling(B):
    """Lane tile (multiple of 128) and padded batch giving an even grid so v7x's
    two TensorCores split the 'parallel' batch axis evenly; large tiles amortize
    the ~0.35us/step overhead on v5e/v6e."""
    b_pad = _round_up(max(B, 1), 128)
    n = -(-b_pad // BLOCK_B_MAX)          # ceil
    if b_pad >= 256:
        n = max(n, 2)                     # give both TCs a tile
    if n > 1 and n % 2:
        n += 1                            # even grid -> balanced 2-TC split
    bt = _round_up(-(-b_pad // n), 128)
    return bt, bt * n


@jax.jit
def mlp_forward(x, w_pack, b_pack):
    """x: (B, 9) float32 -> probabilities (B, 2) float32."""
    B = x.shape[0]
    bt, b_pad = _choose_tiling(B)

    xf = x.astype(jnp.float32)
    if b_pad != B:
        xf = jnp.pad(xf, ((0, b_pad - B), (0, 0)))     # cheap row pad, no transpose

    y_t = pl.pallas_call(
        mlp_kernel,
        out_shape=jax.ShapeDtypeStruct((OUT_DIM, b_pad), jnp.float32),
        grid=(b_pad // bt,),
        in_specs=[
            pl.BlockSpec((bt, IN_DIM), lambda i: (i, 0)),                # x tile, native layout
            pl.BlockSpec((NUM_LAYERS * NODE, NODE), lambda i: (0, 0)),   # weights (resident)
            pl.BlockSpec((NUM_LAYERS * NODE, 1), lambda i: (0, 0)),      # biases  (resident)
        ],
        out_specs=pl.BlockSpec((OUT_DIM, bt), lambda i: (0, i)),
        compiler_params=pltpu.CompilerParams(
            dimension_semantics=("parallel",)),
    )(xf, w_pack, b_pack)

    # Consumers that accept a (2, B) layout should use y_t[:, :B] directly and
    # skip this small transpose; kept here for PyTorch (B, 2) output parity.
    return y_t[:, :B].T


# ---------------- parameter construction (matches PyTorch init_weights) ----------------

def xavier_uniform(key, fan_out, fan_in, dtype=jnp.float32):
    # nn.init.xavier_uniform_ bound for nn.Linear(fan_in, fan_out); stored (out, in).
    bound = jnp.sqrt(6.0 / (fan_in + fan_out)).astype(dtype)
    return jax.random.uniform(key, (fan_out, fan_in), dtype, minval=-bound, maxval=bound)


def init_params(key):
    dims = [(NODE, IN_DIM), (NODE, NODE), (NODE, NODE), (NODE, NODE), (OUT_DIM, NODE)]
    keys = jax.random.split(key, len(dims))
    params = []
    for k, (fo, fi) in zip(keys, dims):
        w = xavier_uniform(k, fo, fi)
        b = jnp.zeros((fo,), jnp.float32)   # nn.init.constant_(bias, 0.0)
        params.append((w, b))
    return params


def pack_params(params):
    """Pack per-layer (W(out,in), b(out,)) into (80,16) weights and (80,1) biases."""
    w_pack = jnp.zeros((NUM_LAYERS * NODE, NODE), jnp.float32)
    b_pack = jnp.zeros((NUM_LAYERS * NODE, 1), jnp.float32)
    for l, (w, b) in enumerate(params):
        fo, fi = w.shape
        w_pack = w_pack.at[l * NODE:l * NODE + fo, :fi].set(w)
        b_pack = b_pack.at[l * NODE:l * NODE + fo, 0].set(b)
    return w_pack, b_pack


def reference_forward(x, params):
    # Pure-JAX reference with PyTorch semantics (eval mode), f32-exact matmuls.
    h = x.astype(jnp.float32)
    for i, (w, b) in enumerate(params):
        h = jnp.dot(h, w.T, precision=lax.Precision.HIGHEST) + b
        if i < 4:
            h = jnp.where(h >= 0, h, LEAK * h)
    return jax.nn.softmax(h, axis=1)


if __name__ == "__main__":
    key = jax.random.PRNGKey(0)
    k_param, k_x1, k_x2 = jax.random.split(key, 3)

    params = init_params(k_param)
    w_pack, b_pack = pack_params(params)

    # Small batch (single 128-lane tile, row-padded 8 -> 128).
    x_small = jax.random.normal(k_x1, (8, IN_DIM), jnp.float32)
    y_small = mlp_forward(x_small, w_pack, b_pack)
    jax.block_until_ready(y_small)

    # Larger batch: even 2-step grid (two 640-lane tiles) + tail row-pad path.
    x_big = jax.random.normal(k_x2, (1200, IN_DIM), jnp.float32)
    y_big = mlp_forward(x_big, w_pack, b_pack)
    jax.block_until_ready(y_big)

    for x, y in ((x_small, y_small), (x_big, y_big)):
        assert y.shape == (x.shape[0], OUT_DIM)
        y_ref = reference_forward(x, params)
        max_err = float(jnp.max(jnp.abs(y - y_ref)))
        assert max_err < 1e-3, max_err
        assert bool(jnp.all(jnp.abs(jnp.sum(y, axis=1) - 1.0) < 1e-5))

    print("KERNEL_OK")
</pallas_src>

<mosaic_0001>
module attributes {stable_mosaic.version = 11 : i64} {
  func.func @mlp_kernel(%arg0: i32, %arg1: memref<128x9xf32, #tpu.memory_space<vmem>>, %arg2: memref<80x16xf32, #tpu.memory_space<vmem>>, %arg3: memref<80x1xf32, #tpu.memory_space<vmem>>, %arg4: memref<2x128xf32, #tpu.memory_space<vmem>>) attributes {dimension_semantics = [#tpu.dimension_semantics<parallel>], iteration_bounds = array<i64: 1>, scalar_prefetch = 0 : i64, scratch_operands = 0 : i64, tpu.core_type = #tpu.core_type<tc>, window_params = [{transform_indices = @transform_0, window_bounds = array<i64: 128, 9>}, {pipeline_mode = #tpu.pipeline_mode<synchronous>, transform_indices = @transform_1, window_bounds = array<i64: 80, 16>}, {pipeline_mode = #tpu.pipeline_mode<synchronous>, transform_indices = @transform_2, window_bounds = array<i64: 80, 1>}, {transform_indices = @transform_3, window_bounds = array<i64: 2, 128>}]} {
    %c0 = arith.constant 0 : index
    %c0_0 = arith.constant 0 : index
    %0 = vector.load %arg2[%c0, %c0_0] : memref<80x16xf32, #tpu.memory_space<vmem>>, vector<16x9xf32>
    %c0_1 = arith.constant 0 : index
    %c0_2 = arith.constant 0 : index
    %1 = vector.load %arg1[%c0_1, %c0_2] : memref<128x9xf32, #tpu.memory_space<vmem>>, vector<128x9xf32>
    %cst = arith.constant dense<0.000000e+00> : vector<16x128xf32>
    %2 = tpu.matmul %0, %1, %cst {dimension_numbers = #tpu.dot_dimension_numbers<[1], [1], [0], [0], [0, 0, 1, 0], [], []>} : vector<16x9xf32>, vector<128x9xf32>, vector<16x128xf32> -> vector<16x128xf32>
    %c0_3 = arith.constant 0 : index
    %c0_4 = arith.constant 0 : index
    %3 = vector.load %arg3[%c0_3, %c0_4] : memref<80x1xf32, #tpu.memory_space<vmem>>, vector<16x1xf32>
    %4 = vector.broadcast %3 : vector<16x1xf32> to vector<16x128xf32>
    %5 = arith.addf %2, %4 : vector<16x128xf32>
    %cst_5 = arith.constant 1.000000e-01 : f32
    %6 = vector.broadcast %cst_5 : f32 to vector<16x128xf32>
    %7 = arith.mulf %6, %5 : vector<16x128xf32>
    %8 = arith.maximumf %5, %7 : vector<16x128xf32>
    %c16 = arith.constant 16 : index
    %c0_6 = arith.constant 0 : index
    %9 = vector.load %arg2[%c16, %c0_6] : memref<80x16xf32, #tpu.memory_space<vmem>>, vector<16x16xf32>
    %c16_7 = arith.constant 16 : index
    %c0_8 = arith.constant 0 : index
    %10 = vector.load %arg3[%c16_7, %c0_8] : memref<80x1xf32, #tpu.memory_space<vmem>>, vector<16x1xf32>
    %cst_9 = arith.constant dense<0.000000e+00> : vector<16x128xf32>
    %11 = tpu.matmul %9, %8, %cst_9 {dimension_numbers = #tpu.dot_dimension_numbers<[1], [0], [0], [1], [0, 0, 1, 1], [], []>} : vector<16x16xf32>, vector<16x128xf32>, vector<16x128xf32> -> vector<16x128xf32>
    %12 = vector.broadcast %10 : vector<16x1xf32> to vector<16x128xf32>
    %13 = arith.addf %11, %12 : vector<16x128xf32>
    %cst_10 = arith.constant 1.000000e-01 : f32
    %14 = vector.broadcast %cst_10 : f32 to vector<16x128xf32>
    %15 = arith.mulf %14, %13 : vector<16x128xf32>
    %16 = arith.maximumf %13, %15 : vector<16x128xf32>
    %c32 = arith.constant 32 : index
    %c0_11 = arith.constant 0 : index
    %17 = vector.load %arg2[%c32, %c0_11] : memref<80x16xf32, #tpu.memory_space<vmem>>, vector<16x16xf32>
    %c32_12 = arith.constant 32 : index
    %c0_13 = arith.constant 0 : index
    %18 = vector.load %arg3[%c32_12, %c0_13] : memref<80x1xf32, #tpu.memory_space<vmem>>, vector<16x1xf32>
    %cst_14 = arith.constant dense<0.000000e+00> : vector<16x128xf32>
    %19 = tpu.matmul %17, %16, %cst_14 {dimension_numbers = #tpu.dot_dimension_numbers<[1], [0], [0], [1], [0, 0, 1, 1], [], []>} : vector<16x16xf32>, vector<16x128xf32>, vector<16x128xf32> -> vector<16x128xf32>
    %20 = vector.broadcast %18 : vector<16x1xf32> to vector<16x128xf32>
    %21 = arith.addf %19, %20 : vector<16x128xf32>
    %cst_15 = arith.constant 1.000000e-01 : f32
    %22 = vector.broadcast %cst_15 : f32 to vector<16x128xf32>
    %23 = arith.mulf %22, %21 : vector<16x128xf32>
    %24 = arith.maximumf %21, %23 : vector<16x128xf32>
    %c48 = arith.constant 48 : index
    %c0_16 = arith.constant 0 : index
    %25 = vector.load %arg2[%c48, %c0_16] : memref<80x16xf32, #tpu.memory_space<vmem>>, vector<16x16xf32>
    %c48_17 = arith.constant 48 : index
    %c0_18 = arith.constant 0 : index
    %26 = vector.load %arg3[%c48_17, %c0_18] : memref<80x1xf32, #tpu.memory_space<vmem>>, vector<16x1xf32>
    %cst_19 = arith.constant dense<0.000000e+00> : vector<16x128xf32>
    %27 = tpu.matmul %25, %24, %cst_19 {dimension_numbers = #tpu.dot_dimension_numbers<[1], [0], [0], [1], [0, 0, 1, 1], [], []>} : vector<16x16xf32>, vector<16x128xf32>, vector<16x128xf32> -> vector<16x128xf32>
    %28 = vector.broadcast %26 : vector<16x1xf32> to vector<16x128xf32>
    %29 = arith.addf %27, %28 : vector<16x128xf32>
    %cst_20 = arith.constant 1.000000e-01 : f32
    %30 = vector.broadcast %cst_20 : f32 to vector<16x128xf32>
    %31 = arith.mulf %30, %29 : vector<16x128xf32>
    %32 = arith.maximumf %29, %31 : vector<16x128xf32>
    %c64 = arith.constant 64 : index
    %c0_21 = arith.constant 0 : index
    %33 = vector.load %arg2[%c64, %c0_21] : memref<80x16xf32, #tpu.memory_space<vmem>>, vector<2x16xf32>
    %c64_22 = arith.constant 64 : index
    %c0_23 = arith.constant 0 : index
    %34 = vector.load %arg3[%c64_22, %c0_23] : memref<80x1xf32, #tpu.memory_space<vmem>>, vector<2x1xf32>
    %cst_24 = arith.constant dense<0.000000e+00> : vector<2x128xf32>
    %35 = tpu.matmul %33, %32, %cst_24 {dimension_numbers = #tpu.dot_dimension_numbers<[1], [0], [0], [1], [0, 0, 1, 1], [], []>} : vector<2x16xf32>, vector<16x128xf32>, vector<2x128xf32> -> vector<2x128xf32>
    %36 = vector.broadcast %34 : vector<2x1xf32> to vector<2x128xf32>
    %37 = arith.addf %35, %36 : vector<2x128xf32>
    %38 = vector.extract_strided_slice %37 {offsets = [0, 0], sizes = [1, 128], strides = [1, 1]} : vector<2x128xf32> to vector<1x128xf32>
    %39 = vector.extract_strided_slice %37 {offsets = [1, 0], sizes = [1, 128], strides = [1, 1]} : vector<2x128xf32> to vector<1x128xf32>
    %40 = arith.maximumf %38, %39 : vector<1x128xf32>
    %41 = arith.subf %38, %40 : vector<1x128xf32>
    %42 = math.exp %41 : vector<1x128xf32>
    %43 = arith.subf %39, %40 : vector<1x128xf32>
    %44 = math.exp %43 : vector<1x128xf32>
    %45 = arith.addf %42, %44 : vector<1x128xf32>
    %46 = tpu.reciprocal %45 : vector<1x128xf32> -> vector<1x128xf32>
    %47 = arith.mulf %42, %46 : vector<1x128xf32>
    %c0_25 = arith.constant 0 : index
    %c0_26 = arith.constant 0 : index
    %48 = vector.load %arg4[%c0_25, %c0_26] : memref<2x128xf32, #tpu.memory_space<vmem>>, vector<1x128xf32>
    tpu.vector_store %arg4[%c0_25, %c0_26], %47 {strides = array<i32>} : memref<2x128xf32, #tpu.memory_space<vmem>>, vector<1x128xf32>,
    %49 = arith.mulf %44, %46 : vector<1x128xf32>
    %c1 = arith.constant 1 : index
    %c0_27 = arith.constant 0 : index
    %50 = vector.load %arg4[%c1, %c0_27] : memref<2x128xf32, #tpu.memory_space<vmem>>, vector<1x128xf32>
    tpu.vector_store %arg4[%c1, %c0_27], %49 {strides = array<i32>} : memref<2x128xf32, #tpu.memory_space<vmem>>, vector<1x128xf32>,
    return
  }
  func.func @transform_0(%arg0: i32) -> (i32, i32) {
    %c0_i32 = arith.constant 0 : i32
    %c0_i32_0 = arith.constant 0 : i32
    return %arg0, %c0_i32 : i32, i32
  }
  func.func @transform_1(%arg0: i32) -> (i32, i32) {
    %c0_i32 = arith.constant 0 : i32
    %c0_i32_0 = arith.constant 0 : i32
    %c0_i32_1 = arith.constant 0 : i32
    return %c0_i32, %c0_i32_0 : i32, i32
  }
  func.func @transform_2(%arg0: i32) -> (i32, i32) {
    %c0_i32 = arith.constant 0 : i32
    %c0_i32_0 = arith.constant 0 : i32
    %c0_i32_1 = arith.constant 0 : i32
    return %c0_i32, %c0_i32_0 : i32, i32
  }
  func.func @transform_3(%arg0: i32) -> (i32, i32) {
    %c0_i32 = arith.constant 0 : i32
    %c0_i32_0 = arith.constant 0 : i32
    return %c0_i32, %arg0 : i32, i32
  }
}

</mosaic_0001>

<bundles_post_ra>
// kernel: mlp_forward.1
= control target key start
LH: loop header
LB: loop body
LE: loop exit
PB: predicated region body
PF: predicated region fallthrough
CT: control target
= control target key end

     0   :  { %vm44_vm0 = vcmask 72704   ;;  %v717_v2 = vmov 0   ;;  %vm192_vm1 = vcmask 130048   ;;  %vm719_vm2 = vmmov 0   ;;  %s889_s0 = inlined_call_operand.vmem [shape: f32[128,9], index: 0, kind: input, shape index: {}]   ;;  %s890_s1 = inlined_call_operand.vmem [shape: f32[80,16], index: 1, kind: input, shape index: {}]   ;;  %s891_s2 = inlined_call_operand.vmem [shape: f32[80,1], index: 2, kind: input, shape index: {}]   ;;  %s892_s3 = inlined_call_operand.vmem [shape: f32[2,128], index: 3, kind: output, shape index: {}]  }
   0x1   :  { %v31_v0 = vld [vmem:[%s889_s0 + $0x78] sm:$0xff]  ;;  %v30_v1 = vld [vmem:[%s889_s0 + $0x70] sm:$0xff]  ;;  %709 = vset.pattern.permute.xlu0 %v717_v2  ;;  %710 = vset.pattern.permute.xlu1 %v717_v2  ;;  %v29_v3 = vld [vmem:[%s889_s0 + $0x68] sm:$0xff] }
   0x2   :  { %643 = vmatprep.subr.msk.mxu0 %vm44_vm0, %v31_v0  ;;  %v14_v4 = vld [vmem:[%s890_s1] sm:$0xff]  ;;  %v33_v5 = vld [vmem:[%s891_s2 + $0x8] sm:$0xff]  ;;  %v27_v8 = vld [vmem:[%s889_s0 + $0x58] sm:$0xff] }
   0x3   :  { %644 = vmatpush3.xpose.msk.msra.mxu0 %vm44_vm0, %v31_v0  ;;  %675 = vmatprep.mubr.msk.f32.mxu0 %vm44_vm0, %v14_v4  ;;  %v28_v6 = vld [vmem:[%s889_s0 + $0x60] sm:$0xff]  ;;  %v281_v9 = vld [vmem:[%s891_s2 + $0x28] sm:$0xff]  ;;  %v26_v10 = vld [vmem:[%s889_s0 + $0x50] sm:$0xff]  ;;  %v718_v0 = vmov 0.0  }
   0x4   :  { %645 = vmatprep.subr.msk.mxu0 %vm44_vm0, %v30_v1  ;;  %41 = vperm.xlu0 %709, %v33_v5   ;;  %v32_v7 = vld [vmem:[%s891_s2] sm:$0xff]  ;;  %v380_v11 = vld [vmem:[%s891_s2 + $0x38] sm:$0xff]  ;;  %v25_v12 = vld [vmem:[%s889_s0 + $0x48] sm:$0xff] }
   0x5   :  { %v477_v13 = vld [vmem:[%s891_s2 + $0x40] sm:$0x3]  ;;  %v23_v15 = vld [vmem:[%s889_s0 + $0x38] sm:$0xff]  ;;  %v22_v16 = vld [vmem:[%s889_s0 + $0x30] sm:$0xff] }
   0x6   :  { %v24_v14 = vld [vmem:[%s889_s0 + $0x40] sm:$0xff]  ;;  %v21_v17 = vld [vmem:[%s889_s0 + $0x28] sm:$0xff]  ;;  %v19_v19 = vld [vmem:[%s889_s0 + $0x18] sm:$0xff] }
   0x7   :  { %646 = vmatpush3.xpose.msk.msra.mxu0 %vm44_vm0, %v30_v1  ;;  %v20_v18 = vld [vmem:[%s889_s0 + $0x20] sm:$0xff]  ;;  %v18_v20 = vld [vmem:[%s889_s0 + $0x10] sm:$0xff]  ;;  %v17_v21 = vld [vmem:[%s889_s0 + $0x8] sm:$0xff] }
   0x8   :  { %647 = vmatprep.subr.msk.mxu0 %vm44_vm0, %v29_v3  ;;  %36 = vperm.xlu0 %709, %v32_v7   ;;  %v16_v22 = vld [vmem:[%s889_s0] sm:$0xff]  ;;  %v15_v23 = vld [vmem:[%s890_s1 + $0x8] sm:$0xff]  ;;  %v178_v24 = vld [vmem:[%s890_s1 + $0x10] sm:$0xff] }
   0x9   :  { %682 = vmatprep.mubr.msk.f32.mxu1 %vm192_vm1, %v178_v24  ;;  %v181_v25 = vld [vmem:[%s891_s2 + $0x18] sm:$0xff]  ;;  %v180_v26 = vld [vmem:[%s891_s2 + $0x10] sm:$0xff]  ;;  %v280_v27 = vld [vmem:[%s891_s2 + $0x20] sm:$0xff] }
   0xa   :  { %189 = vperm.xlu1 %710, %v181_v25   ;;  %v379_v28 = vld [vmem:[%s891_s2 + $0x30] sm:$0xff]  ;;  %v179_v39 = vld [vmem:[%s890_s1 + $0x18] sm:$0xff]  ;;  %v278_v40 = vld [vmem:[%s890_s1 + $0x20] sm:$0xff] }
   0xb   :  { %648 = vmatpush3.xpose.msk.msra.mxu0 %vm44_vm0, %v29_v3  ;;  %v279_v51 = vld [vmem:[%s890_s1 + $0x28] sm:$0xff]  ;;  %v377_v52 = vld [vmem:[%s890_s1 + $0x30] sm:$0xff]  ;;  %v378_v63 = vld [vmem:[%s890_s1 + $0x38] sm:$0xff] }
   0xc   :  { %649 = vmatprep.subr.msk.mxu0 %vm44_vm0, %v28_v6  ;;  %289 = vperm.xlu0 %709, %v281_v9  }
   0xe   :  { %184 = vperm.xlu1 %710, %v180_v26  }
   0xf   :  { %650 = vmatpush3.xpose.msk.msra.mxu0 %vm44_vm0, %v28_v6 }
  0x10   :  { %651 = vmatprep.subr.msk.mxu0 %vm44_vm0, %v27_v8  ;;  %388 = vperm.xlu0 %709, %v380_v11   ;;  %v476_v11 = vld [vmem:[%s890_s1 + $0x40] sm:$0x3] }
  0x12   :  { %284 = vperm.xlu1 %710, %v280_v27  }
  0x13   :  { %652 = vmatpush3.xpose.msk.msra.mxu0 %vm44_vm0, %v27_v8 }
  0x14   :  { %653 = vmatprep.subr.msk.mxu0 %vm44_vm0, %v26_v10  ;;  %480 = vperm.xlu0 %709, %v477_v13  }
  0x16   :  { %383 = vperm.xlu1 %710, %v379_v28  }
  0x17   :  { %654 = vmatpush3.xpose.msk.msra.mxu0 %vm44_vm0, %v26_v10 }
  0x18   :  { %655 = vmatprep.subr.msk.mxu0 %vm44_vm0, %v25_v12 }
  0x1b   :  { %656 = vmatpush3.xpose.msk.msra.mxu0 %vm44_vm0, %v25_v12 }
  0x1c   :  { %657 = vmatprep.subr.msk.mxu0 %vm44_vm0, %v24_v14 }
  0x1f   :  { %658 = vmatpush3.xpose.msk.msra.mxu0 %vm44_vm0, %v24_v14 }
  0x20   :  { %659 = vmatprep.subr.msk.mxu0 %vm44_vm0, %v23_v15 }
  0x23   :  { %660 = vmatpush3.xpose.msk.msra.mxu0 %vm44_vm0, %v23_v15 }
  0x24   :  { %661 = vmatprep.subr.msk.mxu0 %vm44_vm0, %v22_v16 }
  0x27   :  { %662 = vmatpush3.xpose.msk.msra.mxu0 %vm44_vm0, %v22_v16 }
  0x28   :  { %663 = vmatprep.subr.msk.mxu0 %vm44_vm0, %v21_v17 }
  0x2b   :  { %664 = vmatpush3.xpose.msk.msra.mxu0 %vm44_vm0, %v21_v17 }
  0x2c   :  { %665 = vmatprep.subr.msk.mxu0 %vm44_vm0, %v20_v18 }
  0x2f   :  { %666 = vmatpush3.xpose.msk.msra.mxu0 %vm44_vm0, %v20_v18 }
  0x30   :  { %667 = vmatprep.subr.msk.mxu0 %vm44_vm0, %v19_v19 }
  0x33   :  { %668 = vmatpush3.xpose.msk.msra.mxu0 %vm44_vm0, %v19_v19 }
  0x34   :  { %669 = vmatprep.subr.msk.mxu0 %vm44_vm0, %v18_v20 }
  0x37   :  { %670 = vmatpush3.xpose.msk.msra.mxu0 %vm44_vm0, %v18_v20 }
  0x38   :  { %671 = vmatprep.subr.msk.mxu0 %vm44_vm0, %v17_v21 }
  0x3b   :  { %672 = vmatpush3.xpose.msk.msra.mxu0 %vm44_vm0, %v17_v21 }
  0x3c   :  { %673 = vmatprep.subr.msk.mxu0 %vm44_vm0, %v16_v22 }
  0x3f   :  { %674 = vmatpush3.xpose.msk.msra.mxu0 %vm44_vm0, %v16_v22 }
  0x42   :  { %676 = vmatmul.mubr.msk.f32.vlgmr.msra.gmra.mxu0 %vm44_vm0, %v15_v23 }
  0x7f   :  { %v42_v29 = vpop.permute.xlu0 %41 }
  0x83   :  { %v37_v32 = vpop.permute.xlu0 %36 }
  0x85   :  { %v190_v41 = vpop.permute.xlu1 %189 }
  0x87   :  { %v290_v53 = vpop.permute.xlu0 %289 }
  0x89   :  { %v185_v44 = vpop.permute.xlu1 %184 }
  0x8b   :  { %v389_v1 = vpop.permute.xlu0 %388 }
  0x8d   :  { %v285_v56 = vpop.permute.xlu1 %284 }
  0x8f   :  { %v481_v12 = vpop.permute.xlu0 %480 }
  0x91   :  { %v384_v4 = vpop.permute.xlu1 %383 }
 0x102   :  { %v677_v30 = vpop.f32.mrf.mxu0 }
 0x103   :  { %v171_v31 = vadd.f32 %v677_v30, %v42_v29 }
 0x104   :  { %v165_v33 = vpop.f32.mrf.mxu0 }
 0x105   :  { %v175_v34 = vmul.f32 0.1, %v171_v31  ;;  %v166_v35 = vadd.f32 %v165_v33, %v37_v32 }
 0x107   :  { %v174_v36 = vmul.f32 0.1, %v166_v35  ;;  %v177_v37 = vmax.f32 %v171_v31, %v175_v34 }
 0x109   :  { %v176_v38 = vmax.f32 %v166_v35, %v174_v36  ;;  %678 = vmatprep.subr.mxu1 %v177_v37 }
 0x10a   :  { %679 = vmatpush3.msra.mxu1 %v177_v37 }
 0x10b   :  { %680 = vmatprep.subr.mxu1 %v176_v38 }
 0x10c   :  { %681 = vmatpush3.msra.mxu1 %v176_v38 }
 0x10d   :  { %683 = vmatmul.mubr.msk.f32.vlgmr.msra.gmra.mxu1 %vm192_vm1, %v179_v39 }
 0x10e   :  { %689 = vmatprep.mubr.msk.f32.mxu1 %vm192_vm1, %v278_v40 }
 0x1cd   :  { %v684_v42 = vpop.f32.mrf.mxu1 }
 0x1ce   :  { %v271_v43 = vadd.f32 %v684_v42, %v190_v41 }
 0x1cf   :  { %v265_v45 = vpop.f32.mrf.mxu1 }
 0x1d0   :  { %v275_v46 = vmul.f32 0.1, %v271_v43  ;;  %v266_v47 = vadd.f32 %v265_v45, %v185_v44 }
 0x1d2   :  { %v277_v48 = vmax.f32 %v271_v43, %v275_v46  ;;  %v274_v49 = vmul.f32 0.1, %v266_v47 }
 0x1d4   :  { %v276_v50 = vmax.f32 %v266_v47, %v274_v49  ;;  %685 = vmatprep.subr.mxu1 %v277_v48 }
 0x1d5   :  { %686 = vmatpush3.msra.mxu1 %v277_v48 }
 0x1d6   :  { %687 = vmatprep.subr.mxu1 %v276_v50 }
 0x1d7   :  { %688 = vmatpush3.msra.mxu1 %v276_v50 }
 0x1d8   :  { %690 = vmatmul.mubr.msk.f32.vlgmr.msra.gmra.mxu1 %vm192_vm1, %v279_v51 }
 0x1d9   :  { %696 = vmatprep.mubr.msk.f32.mxu1 %vm192_vm1, %v377_v52 }
 0x298   :  { %v691_v54 = vpop.f32.mrf.mxu1 }
 0x299   :  { %v370_v55 = vadd.f32 %v691_v54, %v290_v53 }
 0x29a   :  { %v364_v57 = vpop.f32.mrf.mxu1 }
 0x29b   :  { %v374_v58 = vmul.f32 0.1, %v370_v55  ;;  %v365_v59 = vadd.f32 %v364_v57, %v285_v56 }
 0x29d   :  { %v376_v60 = vmax.f32 %v370_v55, %v374_v58  ;;  %v373_v61 = vmul.f32 0.1, %v365_v59 }
 0x29f   :  { %v375_v62 = vmax.f32 %v365_v59, %v373_v61  ;;  %692 = vmatprep.subr.mxu1 %v376_v60 }
 0x2a0   :  { %693 = vmatpush3.msra.mxu1 %v376_v60 }
 0x2a1   :  { %694 = vmatprep.subr.mxu1 %v375_v62 }
 0x2a2   :  { %695 = vmatpush3.msra.mxu1 %v375_v62 }
 0x2a3   :  { %697 = vmatmul.mubr.msk.f32.vlgmr.msra.gmra.mxu1 %vm192_vm1, %v378_v63  ;;  %699 = vmatprep.subr.mxu1 %v718_v0 }
 0x2a4   :  { %703 = vmatprep.mubr.msk.f32.mxu1 %vm719_vm2, %v718_v0 }
 0x363   :  { %v698_v2 = vpop.f32.mrf.mxu1 }
 0x364   :  { %v469_v3 = vadd.f32 %v698_v2, %v389_v1 }
 0x365   :  { %v463_v5 = vpop.f32.mrf.mxu1 }
 0x366   :  { %v473_v6 = vmul.f32 0.1, %v469_v3  ;;  %v464_v7 = vadd.f32 %v463_v5, %v384_v4 }
 0x368   :  { %v475_v8 = vmax.f32 %v469_v3, %v473_v6  ;;  %v472_v9 = vmul.f32 0.1, %v464_v7 }
 0x36a   :  { %v474_v10 = vmax.f32 %v464_v7, %v472_v9  ;;  %700 = vmatpush3.msra.mxu1 %v475_v8 }
 0x36b   :  { %701 = vmatprep.subr.mxu1 %v718_v0 }
 0x36c   :  { %702 = vmatpush3.msra.mxu1 %v474_v10 }
 0x36d   :  { %704 = vmatmul.mubr.msk.f32.vlgmr.msra.gmra.mxu1 %vm192_vm1, %v476_v11 }
 0x42d   :  { %v552_v13 = vpop.f32.mrf.mxu1 }
 0x42e   :  { %v553_v14 = vadd.f32 %v552_v13, %v481_v12 }
 0x42f   :  { %v705_v15 = vpop.f32.mrf.mxu1 }
 0x430   :  { %v557_v16 = vrot.slane %v553_v14, 1 }
 0x432   :  { %v559_v17 = vmax.f32 %v553_v14, %v557_v16 }
 0x434   :  { %v560_v18 = vsub.f32 %v553_v14, %v559_v17  ;;  %v564_v19 = vrot.slane %v559_v17, 7 }
 0x436   :  { %v566_v20 = vsub.f32 %v553_v14, %v564_v19  ;;  %v561_v21 = vmul.f32 1.442695, %v560_v18 }
 0x438   :  { %v567_v22 = vmul.f32 1.442695, %v566_v20 }
 0x43a   :  { %711 = vpow2.f32 %v567_v22 }
 0x43b   :  { %713 = vpow2.f32 %v561_v21 }
 0x447   :  { %v712_v23 = vpop.eup %711 }
 0x448   :  { %v570_v24 = vrot.slane %v712_v23, 1  ;;  %v714_v25 = vpop.eup %713 }
 0x44a   :  { %v572_v26 = vadd.f32 %v714_v25, %v570_v24 }
 0x44c   :  { %715 = vrcp.f32 %v572_v26 }
 0x459   :  { %v716_v27 = vpop.eup %715 }
 0x45a   :  { %v574_v28 = vmul.f32 %v716_v27, %v714_v25  ;;  %v577_v29 = vrot.slane %v716_v27, 7 }
 0x45c   :  { %575 = vst [vmem:[%s892_s3] sm:$0x1] %v574_v28  ;;  %v579_v30 = vmul.f32 %v712_v23, %v577_v29 }
 0x45e   :  { %580 = vst [vmem:[%s892_s3] sm:$0x2] %v579_v30 }

</bundles_post_ra>
